<compile_context>
chip_gen: v7x
topology: tpu7x:2x2x1
jax: 0.10.0
libtpu: 0.0.40
codegen_flags: <defaults>
</compile_context>

<pallas_src>
import math

import jax
import jax.numpy as jnp
from jax.experimental import pallas as pl
from jax.experimental.pallas import tpu as pltpu


_TL_TARGET = 65536   # target L-elements per grid step (~3 MB of HBM traffic/step)
_LANE_ALIGN = 1024   # L-tile / padding granularity (multiple of 128)
_CHUNK = 1024        # in-kernel register-blocking chunk along L


def _round_up(x, m):
    return ((x + m - 1) // m) * m


def conv1d_k1_kernel(x_ref, w_ref, b_ref, o_ref):
    """out[c, l] = sum_h w[c, h] * x[h, l] + b[c]  (VPU broadcast-MAC, no MXU).

    x_ref: (H, TL)   w_ref: (C, H)   b_ref: (C, 1)   o_ref: (C, TL)
    """
    H = x_ref.shape[0]
    C, TL = o_ref.shape
    CH = min(_CHUNK, TL)
    num_chunks = TL // CH

    # Tiny parameters: load once per grid step; hoist slices and the bias
    # broadcast out of the chunk loop (JAX does not CSE broadcast_in_dim).
    w = w_ref[...].astype(jnp.float32)                 # (C, H)
    b = b_ref[...].astype(jnp.float32)                 # (C, 1)
    w_cols = [w[:, h:h + 1] for h in range(H)]         # H x (C, 1)
    b_chunk = jnp.broadcast_to(b, (C, CH))             # (C, CH), built once

    def chunk_body(i, carry):
        off = pl.multiple_of(i * CH, CH)               # 128-aligned lane offset
        xc = x_ref[:, pl.ds(off, CH)].astype(jnp.float32)   # (H, CH)
        acc = b_chunk + xc[0:1, :] * w_cols[0]               # (C, CH)
        for h in range(1, H):                                 # static unroll, H small
            acc = acc + xc[h:h + 1, :] * w_cols[h]
        o_ref[:, pl.ds(off, CH)] = acc.astype(o_ref.dtype)   # lane-dense store
        return carry

    jax.lax.fori_loop(0, num_chunks, chunk_body, 0)


def linear_reg_chnl_forward(x, weight, bias):
    """x: (B, 1, H, L); weight: (C, H); bias: (C,). Returns (B, C, L)."""
    B, _, H, L = x.shape
    C = weight.shape[0]

    # Choose the number of L tiles so each is <= _TL_TARGET, then round the
    # tile length up to the 1024-lane granularity (keeps padding waste <~2%
    # for large L while staying lane-dense and chunk-divisible).
    n_l = max(1, -(-L // _TL_TARGET))                  # ceil(L / target)
    TL = _round_up(-(-L // n_l), _LANE_ALIGN)          # per-tile length
    Lp = n_l * TL                                      # padded length
    if Lp != L:
        x = jnp.pad(x, ((0, 0), (0, 0), (0, 0), (0, Lp - L)))
    assert TL % min(_CHUNK, TL) == 0

    bias2 = bias.reshape(C, 1)

    out = pl.pallas_call(
        conv1d_k1_kernel,
        out_shape=jax.ShapeDtypeStruct((B, C, Lp), x.dtype),
        grid=(B, n_l),
        in_specs=[
            # (B, 1, H, Lp): squeeze the two leading size-1 block dims so the
            # kernel sees a contiguous (H, TL) slab (no wrapper squeeze).
            pl.BlockSpec((None, None, H, TL), lambda b, l: (b, 0, 0, l)),
            pl.BlockSpec((C, H), lambda b, l: (0, 0)),
            pl.BlockSpec((C, 1), lambda b, l: (0, 0)),
        ],
        out_specs=pl.BlockSpec((None, C, TL), lambda b, l: (b, 0, l)),
        compiler_params=pltpu.CompilerParams(
            dimension_semantics=("parallel", "parallel"),
        ),
    )(x, weight, bias2)

    return out[:, :, :L]


if __name__ == "__main__":
    # Module config: harmonic_num (in channels) and channel_num (out channels).
    harmonic_num = 4
    channel_num = 8
    B, L = 2, 16

    key = jax.random.PRNGKey(0)
    kx, kw, kb = jax.random.split(key, 3)

    # Deterministic parameter init mimicking PyTorch Conv1d default
    # (uniform in [-1/sqrt(fan_in), 1/sqrt(fan_in)], fan_in = harmonic_num * 1).
    bound = 1.0 / jnp.sqrt(jnp.float32(harmonic_num))
    weight = jax.random.uniform(
        kw, (channel_num, harmonic_num), jnp.float32, -bound, bound
    )
    bias = jax.random.uniform(kb, (channel_num,), jnp.float32, -bound, bound)

    # Input consistent with forward(): (B, 1, harmonic_num, L)
    x = jax.random.normal(kx, (B, 1, harmonic_num, L), jnp.float32)

    out = linear_reg_chnl_forward(x, weight, bias)
    out = jax.block_until_ready(out)

    # Reference check (plain JAX) for correctness.
    x3 = jnp.squeeze(x, axis=1)
    ref = jnp.einsum("ch,bhl->bcl", weight, x3) + bias[None, :, None]
    assert out.shape == (B, channel_num, L)
    assert jnp.allclose(out, ref, atol=1e-5, rtol=1e-5)

    print("KERNEL_OK")
</pallas_src>

<mosaic_0001>
module attributes {stable_mosaic.version = 11 : i64} {
  func.func @conv1d_k1_kernel(%arg0: i32, %arg1: i32, %arg2: memref<1x1x4x1024xf32, #tpu.memory_space<vmem>>, %arg3: memref<8x4xf32, #tpu.memory_space<vmem>>, %arg4: memref<8x1xf32, #tpu.memory_space<vmem>>, %arg5: memref<1x8x1024xf32, #tpu.memory_space<vmem>>) attributes {dimension_semantics = [#tpu.dimension_semantics<parallel>, #tpu.dimension_semantics<parallel>], iteration_bounds = array<i64: 2, 1>, scalar_prefetch = 0 : i64, scratch_operands = 0 : i64, tpu.core_type = #tpu.core_type<tc>, window_params = [{transform_indices = @transform_0, window_bounds = array<i64: 1, 1, 4, 1024>}, {pipeline_mode = #tpu.pipeline_mode<synchronous>, transform_indices = @transform_1, window_bounds = array<i64: 8, 4>}, {pipeline_mode = #tpu.pipeline_mode<synchronous>, transform_indices = @transform_2, window_bounds = array<i64: 8, 1>}, {transform_indices = @transform_3, window_bounds = array<i64: 1, 8, 1024>}]} {
    %c0 = arith.constant 0 : index
    %c0_0 = arith.constant 0 : index
    %0 = vector.load %arg3[%c0, %c0_0] : memref<8x4xf32, #tpu.memory_space<vmem>>, vector<8x4xf32>
    %c0_1 = arith.constant 0 : index
    %c0_2 = arith.constant 0 : index
    %1 = vector.load %arg4[%c0_1, %c0_2] : memref<8x1xf32, #tpu.memory_space<vmem>>, vector<8x1xf32>
    %2 = vector.extract_strided_slice %0 {offsets = [0, 0], sizes = [8, 1], strides = [1, 1]} : vector<8x4xf32> to vector<8x1xf32>
    %3 = vector.extract_strided_slice %0 {offsets = [0, 1], sizes = [8, 1], strides = [1, 1]} : vector<8x4xf32> to vector<8x1xf32>
    %4 = vector.extract_strided_slice %0 {offsets = [0, 2], sizes = [8, 1], strides = [1, 1]} : vector<8x4xf32> to vector<8x1xf32>
    %5 = vector.extract_strided_slice %0 {offsets = [0, 3], sizes = [8, 1], strides = [1, 1]} : vector<8x4xf32> to vector<8x1xf32>
    %6 = vector.shape_cast %1 : vector<8x1xf32> to vector<8x1xf32>
    %7 = vector.broadcast %6 : vector<8x1xf32> to vector<8x1024xf32>
    %c0_i32 = arith.constant 0 : i32
    %c1024_i32 = arith.constant 1024 : i32
    %8 = arith.muli %c0_i32, %c1024_i32 : i32
    %9 = tpu.assume_multiple %8, 1024 : i32
    %c0_3 = arith.constant 0 : index
    %c0_4 = arith.constant 0 : index
    %c0_5 = arith.constant 0 : index
    %10 = arith.index_cast %9 : i32 to index
    %11 = vector.load %arg2[%c0_3, %c0_4, %c0_5, %10] : memref<1x1x4x1024xf32, #tpu.memory_space<vmem>>, vector<1x1x4x1024xf32>
    %12 = vector.shape_cast %11 : vector<1x1x4x1024xf32> to vector<4x1024xf32>
    %13 = vector.extract_strided_slice %12 {offsets = [0, 0], sizes = [1, 1024], strides = [1, 1]} : vector<4x1024xf32> to vector<1x1024xf32>
    %14 = vector.broadcast %13 : vector<1x1024xf32> to vector<8x1024xf32>
    %15 = vector.broadcast %2 : vector<8x1xf32> to vector<8x1024xf32>
    %16 = arith.mulf %14, %15 : vector<8x1024xf32>
    %17 = arith.addf %7, %16 : vector<8x1024xf32>
    %18 = vector.extract_strided_slice %12 {offsets = [1, 0], sizes = [1, 1024], strides = [1, 1]} : vector<4x1024xf32> to vector<1x1024xf32>
    %19 = vector.broadcast %18 : vector<1x1024xf32> to vector<8x1024xf32>
    %20 = vector.broadcast %3 : vector<8x1xf32> to vector<8x1024xf32>
    %21 = arith.mulf %19, %20 : vector<8x1024xf32>
    %22 = arith.addf %17, %21 : vector<8x1024xf32>
    %23 = vector.extract_strided_slice %12 {offsets = [2, 0], sizes = [1, 1024], strides = [1, 1]} : vector<4x1024xf32> to vector<1x1024xf32>
    %24 = vector.broadcast %23 : vector<1x1024xf32> to vector<8x1024xf32>
    %25 = vector.broadcast %4 : vector<8x1xf32> to vector<8x1024xf32>
    %26 = arith.mulf %24, %25 : vector<8x1024xf32>
    %27 = arith.addf %22, %26 : vector<8x1024xf32>
    %28 = vector.extract_strided_slice %12 {offsets = [3, 0], sizes = [1, 1024], strides = [1, 1]} : vector<4x1024xf32> to vector<1x1024xf32>
    %29 = vector.broadcast %28 : vector<1x1024xf32> to vector<8x1024xf32>
    %30 = vector.broadcast %5 : vector<8x1xf32> to vector<8x1024xf32>
    %31 = arith.mulf %29, %30 : vector<8x1024xf32>
    %32 = arith.addf %27, %31 : vector<8x1024xf32>
    %c0_6 = arith.constant 0 : index
    %c0_7 = arith.constant 0 : index
    %33 = arith.index_cast %9 : i32 to index
    %34 = vector.load %arg5[%c0_6, %c0_7, %33] : memref<1x8x1024xf32, #tpu.memory_space<vmem>>, vector<1x8x1024xf32>
    %35 = vector.shape_cast %34 : vector<1x8x1024xf32> to vector<8x1024xf32>
    %36 = vector.shape_cast %32 : vector<8x1024xf32> to vector<1x8x1024xf32>
    tpu.vector_store %arg5[%c0_6, %c0_7, %33], %36 {strides = array<i32>} : memref<1x8x1024xf32, #tpu.memory_space<vmem>>, vector<1x8x1024xf32>,
    %c1_i32 = arith.constant 1 : i32
    return
  }
  func.func @transform_0(%arg0: i32, %arg1: i32) -> (i32, i32, i32, i32) {
    %c0_i32 = arith.constant 0 : i32
    %c0_i32_0 = arith.constant 0 : i32
    %c0_i32_1 = arith.constant 0 : i32
    return %arg0, %c0_i32, %c0_i32_0, %arg1 : i32, i32, i32, i32
  }
  func.func @transform_1(%arg0: i32, %arg1: i32) -> (i32, i32) {
    %c0_i32 = arith.constant 0 : i32
    %c0_i32_0 = arith.constant 0 : i32
    %c0_i32_1 = arith.constant 0 : i32
    return %c0_i32, %c0_i32_0 : i32, i32
  }
  func.func @transform_2(%arg0: i32, %arg1: i32) -> (i32, i32) {
    %c0_i32 = arith.constant 0 : i32
    %c0_i32_0 = arith.constant 0 : i32
    %c0_i32_1 = arith.constant 0 : i32
    return %c0_i32, %c0_i32_0 : i32, i32
  }
  func.func @transform_3(%arg0: i32, %arg1: i32) -> (i32, i32, i32) {
    %c0_i32 = arith.constant 0 : i32
    %c0_i32_0 = arith.constant 0 : i32
    return %arg0, %c0_i32, %arg1 : i32, i32, i32
  }
}

</mosaic_0001>

<bundles_post_ra>
// kernel: tpu_custom_call.1
= control target key start
LH: loop header
LB: loop body
LE: loop exit
PB: predicated region body
PF: predicated region fallthrough
CT: control target
= control target key end

     0   :  { %8 = vsyncpa [#allocation3], 0  ;;  %s1158_s0 = inlined_call_operand.hbm [shape: f32[2,1,4,1024], index: 0, kind: input, shape index: {}]   ;;  %s1159_s1 = inlined_call_operand.vmem [shape: f32[8,4], index: 1, kind: input, shape index: {}]   ;;  %s1160_s2 = inlined_call_operand.vmem [shape: f32[8,1], index: 2, kind: input, shape index: {}]   ;;  %s1161_s3 = inlined_call_operand.hbm [shape: f32[2,8,1024], index: 3, kind: output, shape index: {}]  }
   0x1   :  { %10 = vsyncpa [#allocation3 + $0x1], 0 }
   0x2   :  { %11 = vsyncpa [#allocation4], 0 }
   0x3   :  { %13 = vsyncpa [#allocation4 + $0x1], 0  ;;  %s927_s12 = smov 0   ;;  %s929_s13 = smov 0  }
   0x4   :  { %s931_s14 = smov 0   ;;  %s933_s15 = smov 0  }
   0x5   :  { %s935_s16 = smov 0   ;;  %s937_s17 = smov 0  }
   0x6 LB: > { %s700_s18 = sadd.s32 4294967295, %s899_s17   ;;  %s701_s19 = sadd.s32 4294967294, %s899_s17   ;;  %s899_s17 = sphi %s937_s17, %s19_s17   ;;  %s895_s16 = sphi %s935_s16, %s1177_s16   ;;  %s891_s15 = sphi %s933_s15, %s1176_s15   ;;  %s887_s14 = sphi %s931_s14, %s1175_s14   ;;  %s883_s13 = sphi %s929_s13, %s1174_s13   ;;  %s879_s12 = sphi %s927_s12, %s1173_s12  }
   0x7   : > { %s31_s20 = sadd.s32 1, %s895_s16  ;;  %s40_s21 = sadd.s32 1, %s887_s14 }
   0x8   : > { %p33_p0 = scmp.ge.s32.totalorder %s31_s20, 2  ;;  %p47_p1 = scmp.ne.s32.totalorder %s887_s14, %s883_s13 }
   0x9   : > { %p48_p2 = scmp.eq.s32.totalorder %s899_s17, 0  ;;  %p53_p3 = scmp.ne.s32.totalorder %s883_s13, %s879_s12 }
   0xa   : > { %s1179_s20 = smov (%p33_p0, %s31_s20), 0  ;;  %p54_p5 = scmp.eq.s32.totalorder %s700_s18, 0 }
   0xb   : > { %p968_p4 = por %p48_p2, %p47_p1  ;;  %s35_s23 = ssub.s32 %s895_s16, %s1179_s20 }
   0xc   : > { %p121_p6 = scmp.eq.s32.totalorder %s700_s18, 1  ;;  %p38_p7 = scmp.eq.s32.totalorder %s35_s23, 0 }
   0xd   : > { %p974_p8 = por %p54_p5, %p53_p3  ;;  %p127_p10 = scmp.eq.s32.totalorder %s701_s19, 1 }
   0xe   : > { %p978_p9 = por %p121_p6, %p47_p1  ;;  %p729_p13 = scmp.lt.s32.totalorder %s899_s17, 2 }
   0xf   : > { %s983_s26 = scalar_select %p38_p7, %s887_s14, %s40_s21  }
  0x10   : > { %s1165_s25 = scalar_select %p978_p9, 1, 0 }
  0x11   : > { %p985_p11 = por %p127_p10, %p53_p3  ;;  %s153_s28 = sand.u32 1, %s887_s14  }
  0x12   : > { %s704_s29 = sshll.u32 %s153_s28, 5  ;;  %s715_s30 = sshll.u32 %s895_s16, 9 }
  0x13   : > { %s1166_s27 = scalar_select %p985_p11, 1, 0 }
  0x14   : > { %s996_s6 = scalar_lea.hbm %s1158_s0, %s715_s30  ;;  %s157_s7 = scalar_lea.vmem [#allocation2], %s704_s29 }
  0x15   : > { %s167_s8 = sshll.u32 %s157_s7, 4  ;;  %p1002_p0 = pnand %p729_p13, %p968_p4  ;;  %s998_s8 = int_to_ptr.vmem [resolvable:$true] %s167_s8 }
  0x16   : > { %s154_s10 = scalar_lea.sflag [#allocation3], %s153_s28  ;;  %s787_s11 = scalar_lea.hbm %s996_s6, 512 }
  0x17   : > { %p788_p3 = scmp.ne.s32.totalorder %s996_s6, %s787_s11  ;;  %p789_p5 = pneg %p1002_p0 }
  0x18   : > { %s792_s21 = scalar_lea.hbm %s1158_s0, 1024  ;;  %p793_p4 = scmp.lt.u32.totalorder %s996_s6, %s1158_s0 }
  0x19   : > { %p790_p6 = pnand %p789_p5, %p788_p3  ;;  %p794_p10 = scmp.lt.u32.totalorder %s792_s21, %s787_s11 }
  0x1a   : > { %p796_p12 = scmp.lt.u32.totalorder %s787_s11, %s996_s6 }
  0x1b   : > { %p791_p7 = pneg %p790_p6  ;;  %p795_p13 = por %p794_p10, %p793_p4 }
  0x1d   : > { %p797_p1 = por %p796_p12, %p795_p13 }
  0x1f   : > { %p798_p2 = pnand %p797_p1, %p791_p7 }
  0x21   : > { %801 = shalt.err (!%p798_p2)
}
  0x22   : > { %s802_s28 = scalar_lea.vmem %s998_s8, 512  ;;  %s901_s29 = smov [#allocation2]  }
  0x23   : > { %p803_p3 = scmp.ne.s32.totalorder %s998_s8, %s802_s28  ;;  %s807_s30 = sshll.u32 %s901_s29, 4  ;;  %s808_s30 = int_to_ptr.vmem [resolvable:$false] %s807_s30 }
  0x24   : > { %s809_s4 = scalar_lea.vmem %s808_s30, 1024  ;;  %p810_p9 = scmp.lt.s32.totalorder %s998_s8, %s808_s30 }
  0x25   : > { %p805_p6 = pnand %p803_p3, %p789_p5  ;;  %p811_p4 = scmp.lt.s32.totalorder %s809_s4, %s802_s28 }
  0x27   : > { %p806_p11 = pneg %p805_p6  ;;  %p812_p10 = por %p811_p4, %p810_p9 }
  0x29   : > { %p813_p12 = pnand %p812_p10, %p806_p11 }
  0x2b   : > { %816 = shalt.err (!%p813_p12)
}
  0x2c   : > { %724 = dma.hbm_to_vmem [thread:$0]  (!%p1002_p0), %s996_s6, 512, %s998_s8, %s154_s10  }
  0x2d   : > { %p1168_p1 = scmp.lt.s32.totalorder %s899_s17, 3  ;;  %p1169_p2 = scmp.ge.s32.totalorder %s899_s17, 1 }
  0x2f   : > { %p173_p5 = pnand %p1169_p2, %p1168_p1 }
  0x30   : > { %s1038_s5 = sand.u32 (!%p173_p5), 1, %s883_s13  }
  0x31   : > { %176 = sbr.rel (%p173_p5) target bundleno = 220 (0xdc), region = 32  ;;  %s708_s7 = sshll.u32 (!%p173_p5), %s1038_s5, 5 }
  0x32   : > { %s179_s11 = scalar_lea.sflag (!%p173_p5), [#allocation3], %s1038_s5  ;;  %s182_s18 = scalar_lea.vmem (!%p173_p5), [#allocation2], %s708_s7 }
  0x38   : > { %870 = dma.done.wait (%p974_p8), %s179_s11, 512  }
  0x39   : > { %872 = vsyncadd (%p974_p8), %s179_s11, 4294966784  ;;  %v902_v0 = vmov 0   ;;  %v903_v1 = vmov 1   ;;  %v207_v2 = vld [vmem:[%s1159_s1] sm:$0xff]  ;;  %v904_v4 = vmov 2   ;;  %v905_v5 = vmov 3  }
  0x3a   : > { %783 = vset.pattern.permute.xlu0 %v902_v0  ;;  %784 = vset.pattern.permute.xlu1 %v903_v1  ;;  %v208_v3 = vld [vmem:[%s1160_s2] sm:$0xff]  ;;  %v222_v6 = vlaneseq  ;;  %v1054_v11 = vld [vmem:[%s182_s18 + $0x8] sm:$0xff]  ;;  %v1056_v13 = vld [vmem:[%s182_s18 + $0x10] sm:$0xff]  ;;  %s709_s24 = sshll.u32 %s1038_s5, 6  ;;  %s716_s19 = sshll.u32 %s891_s15, 10 }
  0x3b   : > { %296 = vperm.xlu0 %783, %v207_v2   ;;  %388 = vperm.xlu1 %784, %v207_v2   ;;  %v1052_v10 = vld [vmem:[%s182_s18] sm:$0xff]  ;;  %v1058_v14 = vld [vmem:[%s182_s18 + $0x18] sm:$0xff]  ;;  %s204_s21 = scalar_lea.vmem [#allocation5], %s709_s24  ;;  %s1109_s28 = scalar_lea.hbm %s1161_s3, %s716_s19 }
  0x3c   : > { %v223_v7 = vshrl.u32 %v222_v6, 7  ;;  %s616_s22 = sshll.u32 %s204_s21, 4  ;;  %s600_s29 = scalar_lea.sflag [#allocation4], %s1038_s5  ;;  %s1111_s22 = int_to_ptr.vmem [resolvable:$true] %s616_s22 }
  0x3d   : > { %s817_s30 = scalar_lea.vmem %s1111_s22, 1024  ;;  %p1170_p9 = scmp.ne.s32.totalorder %s1165_s25, 0 }
  0x3e   : > { %v224_v8 = vsub.s32 0, %v223_v7  ;;  %v228_v9 = vsub.s32 4, %v223_v7  ;;  %v317_v12 = vsub.s32 1, %v223_v7  ;;  %v321_v17 = vsub.s32 5, %v223_v7  ;;  %p818_p8 = scmp.ne.s32.totalorder %s1111_s22, %s817_s30  ;;  %s906_s4 = smov [#allocation5]  }
  0x3f   : > { %211 = vperm.xlu0 %783, %v208_v3   ;;  %785 = vset.pattern.permute.xlu1 %v904_v4  ;;  %v409_v39 = vsub.s32 2, %v223_v7  ;;  %v413_v43 = vsub.s32 6, %v223_v7  ;;  %v501_v47 = vsub.s32 3, %v223_v7  ;;  %v505_v51 = vsub.s32 7, %v223_v7  ;;  %s821_s7 = sshll.u32 %s906_s4, 4  ;;  %s822_s7 = int_to_ptr.vmem [resolvable:$false] %s821_s7 }
  0x40   : > { %480 = vperm.xlu1 %785, %v207_v2   ;;  %v225_v15 = vrot.slane %v1052_v10, %v224_v8  ;;  %v229_v16 = vrot.slane %v1052_v10, %v228_v9  ;;  %v233_v18 = vrot.slane %v1054_v11, %v224_v8  ;;  %v237_v19 = vrot.slane %v1054_v11, %v228_v9  ;;  %p819_p11 = pnand %p818_p8, %p1170_p9  ;;  %s823_s11 = scalar_lea.vmem %s822_s7, 2048 }
  0x41   : > { %v241_v20 = vrot.slane %v1056_v13, %v224_v8  ;;  %v245_v21 = vrot.slane %v1056_v13, %v228_v9  ;;  %v249_v22 = vrot.slane %v1058_v14, %v224_v8  ;;  %v318_v23 = vrot.slane %v1052_v10, %v317_v12  ;;  %p824_p7 = scmp.lt.s32.totalorder %s1111_s22, %s822_s7  ;;  %p825_p13 = scmp.lt.s32.totalorder %s823_s11, %s817_s30 }
  0x42   : > { %v253_v24 = vrot.slane %v1058_v14, %v228_v9  ;;  %v265_v25 = vrot.slane %v225_v15, %v224_v8  ;;  %v269_v26 = vrot.slane %v229_v16, %v224_v8  ;;  %v322_v27 = vrot.slane %v1052_v10, %v321_v17  ;;  %p820_p0 = pneg %p819_p11 }
  0x43   : > { %786 = vset.pattern.permute.xlu0 %v905_v5  ;;  %v273_v28 = vrot.slane %v233_v18, %v224_v8  ;;  %v326_v29 = vrot.slane %v1054_v11, %v317_v12  ;;  %v330_v30 = vrot.slane %v1054_v11, %v321_v17  ;;  %v334_v31 = vrot.slane %v1056_v13, %v317_v12  ;;  %p826_p3 = por %p825_p13, %p824_p7 }
  0x44   : > { %572 = vperm.xlu0 %786, %v207_v2   ;;  %v277_v32 = vrot.slane %v237_v19, %v224_v8  ;;  %v338_v33 = vrot.slane %v1056_v13, %v321_v17  ;;  %v342_v34 = vrot.slane %v1058_v14, %v317_v12  ;;  %v346_v35 = vrot.slane %v1058_v14, %v321_v17 }
  0x45   : > { %v281_v36 = vrot.slane %v241_v20, %v224_v8  ;;  %v285_v37 = vrot.slane %v245_v21, %v224_v8  ;;  %v289_v38 = vrot.slane %v249_v22, %v224_v8  ;;  %v293_v40 = vrot.slane %v253_v24, %v224_v8  ;;  %p827_p6 = pnand %p826_p3, %p820_p0 }
  0x46   : > { %v358_v41 = vrot.slane %v318_v23, %v317_v12  ;;  %v362_v42 = vrot.slane %v322_v27, %v317_v12  ;;  %v366_v44 = vrot.slane %v326_v29, %v317_v12  ;;  %v370_v45 = vrot.slane %v330_v30, %v317_v12 }
  0x47   : > { %v374_v46 = vrot.slane %v334_v31, %v317_v12  ;;  %v378_v48 = vrot.slane %v338_v33, %v317_v12  ;;  %v382_v49 = vrot.slane %v342_v34, %v317_v12  ;;  %v386_v50 = vrot.slane %v346_v35, %v317_v12 }
  0x48   : > { %v410_v52 = vrot.slane %v1052_v10, %v409_v39  ;;  %v418_v53 = vrot.slane %v1054_v11, %v409_v39  ;;  %v426_v54 = vrot.slane %v1056_v13, %v409_v39  ;;  %v434_v55 = vrot.slane %v1058_v14, %v409_v39 }
  0x49   : > { %v414_v56 = vrot.slane %v1052_v10, %v413_v43  ;;  %v422_v57 = vrot.slane %v1054_v11, %v413_v43  ;;  %v430_v58 = vrot.slane %v1056_v13, %v413_v43  ;;  %v438_v59 = vrot.slane %v1058_v14, %v413_v43 }
  0x4a   : > { %v502_v60 = vrot.slane %v1052_v10, %v501_v47  ;;  %v510_v61 = vrot.slane %v1054_v11, %v501_v47  ;;  %v518_v62 = vrot.slane %v1056_v13, %v501_v47  ;;  %v526_v63 = vrot.slane %v1058_v14, %v501_v47 }
  0x4b   : > { %v506_v0 = vrot.slane %v1052_v10, %v505_v51  ;;  %v514_v1 = vrot.slane %v1054_v11, %v505_v51  ;;  %v522_v2 = vrot.slane %v1056_v13, %v505_v51  ;;  %v530_v3 = vrot.slane %v1058_v14, %v505_v51 }
  0x4c   : > { %v450_v4 = vrot.slane %v410_v52, %v409_v39  ;;  %v458_v5 = vrot.slane %v418_v53, %v409_v39  ;;  %v466_v6 = vrot.slane %v426_v54, %v409_v39  ;;  %v474_v7 = vrot.slane %v434_v55, %v409_v39 }
  0x4d   : > { %v454_v8 = vrot.slane %v414_v56, %v409_v39  ;;  %v462_v9 = vrot.slane %v422_v57, %v409_v39  ;;  %v470_v12 = vrot.slane %v430_v58, %v409_v39  ;;  %v478_v15 = vrot.slane %v438_v59, %v409_v39 }
  0x4e   : > { %v542_v16 = vrot.slane %v502_v60, %v501_v47  ;;  %v1092_v17 = vrot.slane %v510_v61, %v501_v47  ;;  %v1094_v18 = vrot.slane %v518_v62, %v501_v47  ;;  %v1096_v10 = vrot.slane %v526_v63, %v501_v47 }
  0x4f   : > { %v546_v13 = vrot.slane %v506_v0, %v501_v47  ;;  %v554_v20 = vrot.slane %v514_v1, %v501_v47  ;;  %v562_v14 = vrot.slane %v522_v2, %v501_v47  ;;  %v1098_v21 = vrot.slane %v530_v3, %v501_v47 }
  0xba   : > { %v297_v11 = vpop.permute.xlu0 %296  ;;  %v389_v19 = vpop.permute.xlu1 %388 }
  0xbb   : > { %v299_v22 = vmul.f32 %v297_v11, %v265_v25  ;;  %v300_v23 = vmul.f32 %v297_v11, %v269_v26  ;;  %v301_v24 = vmul.f32 %v297_v11, %v273_v28  ;;  %v302_v27 = vmul.f32 %v297_v11, %v277_v32 }
  0xbc   : > { %v303_v29 = vmul.f32 %v297_v11, %v281_v36  ;;  %v304_v30 = vmul.f32 %v297_v11, %v285_v37  ;;  %v305_v31 = vmul.f32 %v297_v11, %v289_v38  ;;  %v306_v33 = vmul.f32 %v297_v11, %v293_v40 }
  0xbd   : > { %v391_v34 = vmul.f32 %v389_v19, %v358_v41  ;;  %v392_v35 = vmul.f32 %v389_v19, %v362_v42  ;;  %v393_v39 = vmul.f32 %v389_v19, %v366_v44  ;;  %v394_v43 = vmul.f32 %v389_v19, %v370_v45 }
  0xbe   : > { %v395_v51 = vmul.f32 %v389_v19, %v374_v46  ;;  %v396_v52 = vmul.f32 %v389_v19, %v378_v48  ;;  %v397_v53 = vmul.f32 %v389_v19, %v382_v49  ;;  %v398_v54 = vmul.f32 %v389_v19, %v386_v50  ;;  %v212_v55 = vpop.permute.xlu0 %211 }
  0xbf   : > { %v307_v47 = vadd.f32 %v299_v22, %v212_v55  ;;  %v308_v56 = vadd.f32 %v300_v23, %v212_v55  ;;  %v309_v25 = vadd.f32 %v301_v24, %v212_v55  ;;  %v310_v26 = vadd.f32 %v302_v27, %v212_v55  ;;  %v481_v38 = vpop.permute.xlu1 %480 }
  0xc0   : > { %v311_v28 = vadd.f32 %v303_v29, %v212_v55  ;;  %v312_v32 = vadd.f32 %v304_v30, %v212_v55  ;;  %v313_v36 = vadd.f32 %v305_v31, %v212_v55  ;;  %v314_v37 = vadd.f32 %v306_v33, %v212_v55 }
  0xc1   : > { %v399_v40 = vadd.f32 %v391_v34, %v307_v47  ;;  %v400_v41 = vadd.f32 %v392_v35, %v308_v56  ;;  %v401_v42 = vadd.f32 %v393_v39, %v309_v25  ;;  %v402_v44 = vadd.f32 %v394_v43, %v310_v26 }
  0xc2   : > { %v403_v45 = vadd.f32 %v395_v51, %v311_v28  ;;  %v404_v46 = vadd.f32 %v396_v52, %v312_v32  ;;  %v405_v48 = vadd.f32 %v397_v53, %v313_v36  ;;  %v406_v49 = vadd.f32 %v398_v54, %v314_v37 }
  0xc3   : > { %v483_v50 = vmul.f32 %v481_v38, %v450_v4  ;;  %v484_v57 = vmul.f32 %v481_v38, %v454_v8  ;;  %v485_v58 = vmul.f32 %v481_v38, %v458_v5  ;;  %v486_v59 = vmul.f32 %v481_v38, %v462_v9  ;;  %v573_v0 = vpop.permute.xlu0 %572 }
  0xc4   : > { %v487_v60 = vmul.f32 %v481_v38, %v466_v6  ;;  %v488_v61 = vmul.f32 %v481_v38, %v470_v12  ;;  %v489_v62 = vmul.f32 %v481_v38, %v474_v7  ;;  %v490_v63 = vmul.f32 %v481_v38, %v478_v15 }
  0xc5   : > { %v491_v1 = vadd.f32 %v483_v50, %v399_v40  ;;  %v492_v2 = vadd.f32 %v484_v57, %v400_v41  ;;  %v493_v3 = vadd.f32 %v485_v58, %v401_v42  ;;  %v494_v11 = vadd.f32 %v486_v59, %v402_v44 }
  0xc6   : > { %v495_v19 = vadd.f32 %v487_v60, %v403_v45  ;;  %v496_v22 = vadd.f32 %v488_v61, %v404_v46  ;;  %v497_v23 = vadd.f32 %v489_v62, %v405_v48  ;;  %v498_v24 = vadd.f32 %v490_v63, %v406_v49 }
  0xc7   : > { %v575_v27 = vmul.f32 %v573_v0, %v542_v16  ;;  %v576_v29 = vmul.f32 %v573_v0, %v546_v13  ;;  %v577_v4 = vmul.f32 %v573_v0, %v1092_v17  ;;  %v578_v5 = vmul.f32 %v573_v0, %v554_v20 }
  0xc8   : > { %v579_v6 = vmul.f32 %v573_v0, %v1094_v18  ;;  %v580_v7 = vmul.f32 %v573_v0, %v562_v14  ;;  %v581_v8 = vmul.f32 %v573_v0, %v1096_v10  ;;  %v582_v9 = vmul.f32 %v573_v0, %v1098_v21 }
  0xc9   : > { %v583_v12 = vadd.f32 %v575_v27, %v491_v1  ;;  %v584_v15 = vadd.f32 %v576_v29, %v492_v2  ;;  %v585_v30 = vadd.f32 %v577_v4, %v493_v3  ;;  %v586_v31 = vadd.f32 %v578_v5, %v494_v11 }
  0xca   : > { %v587_v16 = vadd.f32 %v579_v6, %v495_v19  ;;  %v588_v13 = vadd.f32 %v580_v7, %v496_v22  ;;  %v589_v17 = vadd.f32 %v581_v8, %v497_v23  ;;  %v590_v20 = vadd.f32 %v582_v9, %v498_v24 }
  0xcb   : > { %591 = vst [vmem:[%s204_s21] sm:$0xff] %v583_v12  ;;  %592 = vst [vmem:[%s204_s21 + $0x8] sm:$0xff] %v584_v15 }
  0xcc   : > { %593 = vst [vmem:[%s204_s21 + $0x10] sm:$0xff] %v585_v30  ;;  %594 = vst [vmem:[%s204_s21 + $0x18] sm:$0xff] %v586_v31 }
  0xcd   : > { %595 = vst [vmem:[%s204_s21 + $0x20] sm:$0xff] %v587_v16  ;;  %596 = vst [vmem:[%s204_s21 + $0x28] sm:$0xff] %v588_v13 }
  0xce   : > { %597 = vst [vmem:[%s204_s21 + $0x30] sm:$0xff] %v589_v17  ;;  %598 = vst [vmem:[%s204_s21 + $0x38] sm:$0xff] %v590_v20 }
  0xcf   : > { %830 = shalt.err (!%p827_p6)
}
  0xd0   : > { %s831_s5 = scalar_lea.hbm %s1109_s28, 1024  ;;  %s835_s8 = scalar_lea.hbm %s1161_s3, 2048 }
  0xd1   : > { %p832_p4 = scmp.ne.s32.totalorder %s1109_s28, %s831_s5  ;;  %p836_p1 = scmp.lt.u32.totalorder %s1109_s28, %s1161_s3 }
  0xd2   : > { %p837_p2 = scmp.lt.u32.totalorder %s835_s8, %s831_s5  ;;  %p839_p8 = scmp.lt.u32.totalorder %s831_s5, %s1109_s28 }
  0xd3   : > { %p833_p10 = pnand %p832_p4, %p1170_p9 }
  0xd4   : > { %p838_p5 = por %p837_p2, %p836_p1 }
  0xd5   : > { %p834_p12 = pneg %p833_p10 }
  0xd6   : > { %p840_p11 = por %p839_p8, %p838_p5 }
  0xd8   : > { %p841_p0 = pnand %p840_p11, %p834_p12 }
  0xda   : > { %844 = shalt.err (!%p841_p0)
}
  0xdb   : > { %719 = dma.vmem_to_hbm [thread:$0]  (%p1170_p9), %s1111_s22, 1024, %s1109_s28, %s600_s29  }
  0xdc PF: > { %s628_s24 = sand.u32 1, %s879_s12   ;;  %p1171_p7 = scmp.ne.s32.totalorder %s1166_s27, 0 }
  0xdd   : > { %p1172_p13 = scmp.ge.s32.totalorder %s899_s17, 2  ;;  %s629_s19 = scalar_lea.sflag [#allocation4], %s628_s24 }
  0xdf   : > { %p726_p3 = pnand %p1172_p13, %p1171_p7 }
  0xe1   : > { %874 = dma.done.wait (!%p726_p3), %s629_s19, 1024  }
  0xe2   : > { %876 = vsyncadd (!%p726_p3), %s629_s19, 4294966272  ;;  %s19_s17 = sadd.s32 1, %s899_s17   ;;  %s1173_s12 = smov %s883_s13 }
  0xe3   : > { %p16_p6 = scmp.ge.s32.totalorder %s19_s17, 4   ;;  %s1174_s13 = smov %s887_s14 }
  0xe4   : > { %s1175_s14 = smov %s983_s26  ;;  %s1176_s15 = smov %s895_s16 }
  0xe5   : > { %s1177_s16 = smov %s1179_s20  ;;  %18 = sbr.rel (!%p16_p6) target bundleno = 6 (0x6), region = 77 }
  0xec   :  { %634 = vsyncpa [#allocation3], 1 }
  0xed   :  { %636 = vsyncpa [#allocation3 + $0x1], 1 }
  0xee   :  { %637 = vsyncpa [#allocation4], 1 }
  0xef   :  { %639 = vsyncpa [#allocation4 + $0x1], 1 }

</bundles_post_ra>
